<compile_context>
chip_gen: v6e
topology: v6e:2x2x1
jax: 0.10.0
libtpu: 0.0.40
codegen_flags: <defaults>
</compile_context>

<pallas_src>
import jax
import jax.numpy as jnp
from jax import lax
from jax.experimental import pallas as pl
from jax.experimental.pallas import tpu as pltpu

EMBED = 10          # embedding_dim
HIDDEN = 20         # hidden_dim
H = HIDDEN // 2     # per-direction LSTM hidden size
TAGS = 5            # len(tag_to_ix)
VOCAB = 10          # vocab_size = len(sentences[0])


def make_bilstm_kernel(B, T):
    """Build the fused BiLSTM emission kernel for a fixed (B, T)."""

    def kernel(ids_ref, proj_ref, whh_ref, wout_ref, out_ref, h_ref):
        """ids_ref  : (T*B, 2)      int32  col0 = fwd token id at (t,b), col1 = token at (T-1-t,b)
           proj_ref : (2V, 8H)      f32    [fwd-masked ; bwd-masked] bias-folded emb @ Wih
           whh_ref  : (2H, 8H)      f32    block-diag [Whh_f ; Whh_b], gate-interleaved cols
           wout_ref : (2H+1, TAGS)  f32    rows 0:2H = hidden2tag weight (fwd|bwd), last row = bias
           out_ref  : (T*B, TAGS)   f32    emission features, time-major rows (t*B + b)
           h_ref    : (T*B, 2H)     f32    scratch: time-major [h_fwd | h_bwd] rows
        """
        TB, V2 = ids_ref.shape[0], proj_ref.shape[0]
        G = proj_ref.shape[1]                 # 8H
        Hh = G // 8
        V = V2 // 2

        # ---- fused gather + input projection, fully time-major 2D -------------
        # one-hot row r has two ones: fwd token id (cols 0:V) and V + bwd token
        # id (cols V:2V); the table halves are gate-column-masked per direction,
        # so a single matmul yields gx for BOTH directions of every step.
        viota = lax.broadcasted_iota(jnp.int32, (TB, V2), 1)
        onehot = jnp.logical_or(ids_ref[:, 0:1] == viota,
                                (ids_ref[:, 1:2] + V) == viota).astype(jnp.float32)
        gx_all = jnp.dot(onehot, proj_ref[...],
                         preferred_element_type=jnp.float32)          # (TB, 8H)

        whh = whh_ref[...]                                            # (2H, 8H), loaded once

        h_cat = jnp.zeros((B, 2 * Hh), jnp.float32)                   # [h_fwd | h_bwd]
        c_cat = jnp.zeros((B, 2 * Hh), jnp.float32)

        # ---- merged, fully-unrolled bidirectional recurrence -------------------
        # step s: forward direction processes time s, backward processes T-1-s;
        # both share one block-diagonal h @ Whh matmul and full-width nonlins.
        for s in range(T):
            gx = gx_all[s * B:(s + 1) * B, :]                          # static sublane slice
            gates = gx + jnp.dot(h_cat, whh, preferred_element_type=jnp.float32)
            sg = jax.nn.sigmoid(gates)       # one EUP pass covers i/f/o of both dirs
            th = jnp.tanh(gates)             # one EUP pass covers g of both dirs
            i_g = sg[:, 0:2 * Hh]
            f_g = sg[:, 2 * Hh:4 * Hh]
            g_g = th[:, 4 * Hh:6 * Hh]
            o_g = sg[:, 6 * Hh:8 * Hh]
            c_cat = f_g * c_cat + i_g * g_g
            h_cat = o_g * jnp.tanh(c_cat)
            # time-major 2D stores (off the recurrence critical path):
            # fwd hidden belongs to time s, backward hidden to time T-1-s.
            h_ref[s * B:(s + 1) * B, 0:Hh] = h_cat[:, 0:Hh]
            h_ref[(T - 1 - s) * B:(T - s) * B, Hh:2 * Hh] = h_cat[:, Hh:2 * Hh]

        # ---- single flat emission projection, reshape-free ---------------------
        hcat = h_ref[...]                                              # (TB, 2H), contiguous
        feats = (jnp.dot(hcat, wout_ref[0:2 * Hh, :],
                         preferred_element_type=jnp.float32)
                 + wout_ref[2 * Hh:2 * Hh + 1, :])
        out_ref[...] = feats                                           # one contiguous store

    return kernel


def _interleave_gates(fwd, bwd):
    """(rows, 4H) fwd/bwd weights (PyTorch gate order i,f,g,o) ->
    (rows, 8H) with columns [i_f,i_b,f_f,f_b,g_f,g_b,o_f,o_b]."""
    rows = fwd.shape[0]
    return jnp.stack([fwd.reshape(rows, 4, H), bwd.reshape(rows, 4, H)],
                     axis=2).reshape(rows, 8 * H)


def pack_params(emb, W_ih_f, W_hh_f, b_ih_f, b_hh_f,
                W_ih_b, W_hh_b, b_ih_b, b_hh_b, W_out, b_out):
    """Pack PyTorch-layout weights into the 3 kernel parameter refs."""
    hp = lax.Precision.HIGHEST
    wih = _interleave_gates(W_ih_f.T, W_ih_b.T)                        # (E, 8H)
    bias = _interleave_gates((b_ih_f + b_hh_f)[None, :],
                             (b_ih_b + b_hh_b)[None, :])               # (1, 8H)
    # One-hot halves each sum to exactly 1, so both gate biases fold into the table.
    proj_table = jnp.dot(emb, wih, precision=hp) + bias                # (VOCAB, 8H)
    col = jnp.arange(8 * H)
    fwd_mask = ((col % (2 * H)) < H).astype(jnp.float32)               # gate-interleaved cols
    proj_packed = jnp.concatenate([proj_table * fwd_mask,              # rows 0:V   -> fwd cols
                                   proj_table * (1.0 - fwd_mask)],     # rows V:2V  -> bwd cols
                                  axis=0)                              # (2*VOCAB, 8H)
    z = jnp.zeros((H, 4 * H), jnp.float32)
    whh = jnp.concatenate([_interleave_gates(W_hh_f.T, z),
                           _interleave_gates(z, W_hh_b.T)], axis=0)    # (2H, 8H)
    wout_aug = jnp.concatenate([W_out.T, b_out[None, :]], axis=0)      # (2H+1, TAGS)
    return dict(proj_packed=proj_packed.astype(jnp.float32),
                whh=whh.astype(jnp.float32),
                wout_aug=wout_aug.astype(jnp.float32))


@jax.jit
def bilstm_crf_forward(sent_ids, params):
    """sent_ids: (B, T) int32 token ids -> (B, T, TAGS) float32 emission features."""
    B, T = sent_ids.shape
    n_tags = params['wout_aug'].shape[1]

    # Time-major token-id pairs built in the wrapper (tiny XLA ops on int32):
    # row r = t*B + b, col0 = id at (b, t) for the fwd direction, col1 = id at
    # (b, T-1-t) for the bwd direction processed on the same step.
    ids_tm = sent_ids.astype(jnp.int32).T                              # (T, B)
    ids2 = jnp.stack([ids_tm.reshape(-1), ids_tm[::-1].reshape(-1)], axis=1)  # (T*B, 2)

    vmem = pl.BlockSpec(memory_space=pltpu.MemorySpace.VMEM)
    feats_tm = pl.pallas_call(
        make_bilstm_kernel(B, T),
        out_shape=jax.ShapeDtypeStruct((T * B, n_tags), jnp.float32),
        in_specs=[vmem, vmem, vmem, vmem],
        out_specs=vmem,
        scratch_shapes=[pltpu.VMEM((T * B, 2 * H), jnp.float32)],
    )(ids2, params['proj_packed'], params['whh'], params['wout_aug'])

    # Metadata-cheap relayout back to PyTorch's batch-first (B, T, TAGS).
    return jnp.transpose(feats_tm.reshape(T, B, n_tags), (1, 0, 2))


def reference_forward(sent_ids, emb, W_ih_f, W_hh_f, b_ih_f, b_hh_f,
                      W_ih_b, W_hh_b, b_ih_b, b_hh_b, W_out, b_out):
    """Pure-JAX reference with PyTorch nn.LSTM / nn.Linear semantics."""
    hp = lax.Precision.HIGHEST
    x = emb[sent_ids].astype(jnp.float32)                   # (B, T, E)
    B, T, _ = x.shape
    xs = jnp.transpose(x, (1, 0, 2))                        # (T, B, E)

    def run_dir(seq, W_ih, W_hh, b_ih, b_hh):
        def step(carry, xt):
            h, c = carry
            g = (jnp.dot(xt, W_ih.T, precision=hp)
                 + jnp.dot(h, W_hh.T, precision=hp) + b_ih + b_hh)
            i = jax.nn.sigmoid(g[:, :H])
            f = jax.nn.sigmoid(g[:, H:2 * H])
            gg = jnp.tanh(g[:, 2 * H:3 * H])
            o = jax.nn.sigmoid(g[:, 3 * H:])
            c = f * c + i * gg
            h = o * jnp.tanh(c)
            return (h, c), h
        h0 = jnp.zeros((B, H), jnp.float32)
        c0 = jnp.zeros((B, H), jnp.float32)
        _, hs = lax.scan(step, (h0, c0), seq)
        return hs                                            # (T, B, H)

    hf = run_dir(xs, W_ih_f, W_hh_f, b_ih_f, b_hh_f)
    hb = run_dir(xs[::-1], W_ih_b, W_hh_b, b_ih_b, b_hh_b)[::-1]
    out = jnp.dot(jnp.concatenate([hf, hb], axis=-1), W_out.T, precision=hp) + b_out
    return jnp.transpose(out, (1, 0, 2))                     # (B, T, TAGS)


if __name__ == "__main__":
    key = jax.random.PRNGKey(0)
    keys = jax.random.split(key, 12)

    def u(kk, shape, bound):
        return jax.random.uniform(kk, shape, jnp.float32, -bound, bound)

    k_lstm = 1.0 / jnp.sqrt(jnp.float32(H))
    k_lin = 1.0 / jnp.sqrt(jnp.float32(HIDDEN))

    emb = jax.random.normal(keys[0], (VOCAB, EMBED), jnp.float32)   # nn.Embedding
    W_ih_f = u(keys[1], (4 * H, EMBED), k_lstm)
    W_hh_f = u(keys[2], (4 * H, H), k_lstm)
    b_ih_f = u(keys[3], (4 * H,), k_lstm)
    b_hh_f = u(keys[4], (4 * H,), k_lstm)
    W_ih_b = u(keys[5], (4 * H, EMBED), k_lstm)
    W_hh_b = u(keys[6], (4 * H, H), k_lstm)
    b_ih_b = u(keys[7], (4 * H,), k_lstm)
    b_hh_b = u(keys[8], (4 * H,), k_lstm)
    W_out = u(keys[9], (TAGS, HIDDEN), k_lin)                        # hidden2tag
    b_out = u(keys[10], (TAGS,), k_lin)

    params = pack_params(emb, W_ih_f, W_hh_f, b_ih_f, b_hh_f,
                         W_ih_b, W_hh_b, b_ih_b, b_hh_b, W_out, b_out)

    # Token ids for the two 10-character sentences (B=2, T=10).
    sent_ids = jax.random.randint(keys[11], (2, 10), 0, VOCAB, dtype=jnp.int32)

    feats = jax.block_until_ready(bilstm_crf_forward(sent_ids, params))

    ref = reference_forward(sent_ids, emb, W_ih_f, W_hh_f, b_ih_f, b_hh_f,
                            W_ih_b, W_hh_b, b_ih_b, b_hh_b, W_out, b_out)

    assert feats.shape == (2, 10, TAGS), feats.shape
    assert feats.dtype == jnp.float32
    max_err = float(jnp.max(jnp.abs(feats - ref)))
    assert jnp.allclose(feats, ref, atol=1e-4, rtol=1e-4), max_err

    # TODO(synk): CRF log-likelihood / Viterbi decode belong to .loss()/.predict(),
    # not to forward(), so they are intentionally not implemented here.
    print("KERNEL_OK")
</pallas_src>

<mosaic_0001>
module attributes {stable_mosaic.version = 11 : i64} {
  func.func @kernel(%arg0: memref<20x2xi32, #tpu.memory_space<vmem>>, %arg1: memref<20x80xf32, #tpu.memory_space<vmem>>, %arg2: memref<20x80xf32, #tpu.memory_space<vmem>>, %arg3: memref<21x5xf32, #tpu.memory_space<vmem>>, %arg4: memref<20x5xf32, #tpu.memory_space<vmem>>, %arg5: memref<20x20xf32, #tpu.memory_space<vmem>>) attributes {dimension_semantics = [], scalar_prefetch = 0 : i64, scratch_operands = 1 : i64, tpu.core_type = #tpu.core_type<tc>} {
    %0 = tpu.iota {dimensions = array<i32: 1>} : vector<20x20xi32>
    %c0 = arith.constant 0 : index
    %c0_0 = arith.constant 0 : index
    %1 = vector.load %arg0[%c0, %c0_0] : memref<20x2xi32, #tpu.memory_space<vmem>>, vector<20x1xi32>
    %2 = vector.broadcast %1 : vector<20x1xi32> to vector<20x20xi32>
    %3 = arith.cmpi eq, %2, %0 : vector<20x20xi32>
    %c0_1 = arith.constant 0 : index
    %c1 = arith.constant 1 : index
    %4 = vector.load %arg0[%c0_1, %c1] : memref<20x2xi32, #tpu.memory_space<vmem>>, vector<20x1xi32>
    %c10_i32 = arith.constant 10 : i32
    %5 = vector.broadcast %c10_i32 : i32 to vector<20x1xi32>
    %6 = arith.addi %4, %5 : vector<20x1xi32>
    %7 = vector.broadcast %6 : vector<20x1xi32> to vector<20x20xi32>
    %8 = arith.cmpi eq, %7, %0 : vector<20x20xi32>
    %9 = arith.ori %3, %8 : vector<20x20xi1>
    %10 = arith.extui %9 : vector<20x20xi1> to vector<20x20xi32>
    %11 = arith.sitofp %10 : vector<20x20xi32> to vector<20x20xf32>
    %c0_2 = arith.constant 0 : index
    %c0_3 = arith.constant 0 : index
    %12 = vector.load %arg1[%c0_2, %c0_3] : memref<20x80xf32, #tpu.memory_space<vmem>>, vector<20x80xf32>
    %cst = arith.constant dense<0.000000e+00> : vector<20x80xf32>
    %13 = tpu.matmul %11, %12, %cst {dimension_numbers = #tpu.dot_dimension_numbers<[1], [0], [0], [1], [0, 0, 1, 1], [], []>} : vector<20x20xf32>, vector<20x80xf32>, vector<20x80xf32> -> vector<20x80xf32>
    %c0_4 = arith.constant 0 : index
    %c0_5 = arith.constant 0 : index
    %14 = vector.load %arg2[%c0_4, %c0_5] : memref<20x80xf32, #tpu.memory_space<vmem>>, vector<20x80xf32>
    %cst_6 = arith.constant 0.000000e+00 : f32
    %15 = vector.broadcast %cst_6 : f32 to vector<2x20xf32>
    %cst_7 = arith.constant 0.000000e+00 : f32
    %16 = vector.broadcast %cst_7 : f32 to vector<2x20xf32>
    %17 = vector.extract_strided_slice %13 {offsets = [0, 0], sizes = [2, 80], strides = [1, 1]} : vector<20x80xf32> to vector<2x80xf32>
    %cst_8 = arith.constant dense<0.000000e+00> : vector<2x80xf32>
    %18 = tpu.matmul %15, %14, %cst_8 {dimension_numbers = #tpu.dot_dimension_numbers<[1], [0], [0], [1], [0, 0, 1, 1], [], []>} : vector<2x20xf32>, vector<20x80xf32>, vector<2x80xf32> -> vector<2x80xf32>
    %19 = arith.addf %17, %18 : vector<2x80xf32>
    %20 = arith.negf %19 : vector<2x80xf32>
    %21 = math.exp %20 : vector<2x80xf32>
    %cst_9 = arith.constant 1.000000e+00 : f32
    %22 = vector.broadcast %cst_9 : f32 to vector<2x80xf32>
    %23 = arith.addf %22, %21 : vector<2x80xf32>
    %24 = arith.divf %22, %23 : vector<2x80xf32>
    %25 = math.tanh %19 : vector<2x80xf32>
    %26 = vector.extract_strided_slice %24 {offsets = [0, 0], sizes = [2, 20], strides = [1, 1]} : vector<2x80xf32> to vector<2x20xf32>
    %27 = vector.extract_strided_slice %24 {offsets = [0, 20], sizes = [2, 20], strides = [1, 1]} : vector<2x80xf32> to vector<2x20xf32>
    %28 = vector.extract_strided_slice %25 {offsets = [0, 40], sizes = [2, 20], strides = [1, 1]} : vector<2x80xf32> to vector<2x20xf32>
    %29 = vector.extract_strided_slice %24 {offsets = [0, 60], sizes = [2, 20], strides = [1, 1]} : vector<2x80xf32> to vector<2x20xf32>
    %30 = arith.mulf %27, %16 : vector<2x20xf32>
    %31 = arith.mulf %26, %28 : vector<2x20xf32>
    %32 = arith.addf %30, %31 : vector<2x20xf32>
    %33 = math.tanh %32 : vector<2x20xf32>
    %34 = arith.mulf %29, %33 : vector<2x20xf32>
    %35 = vector.extract_strided_slice %34 {offsets = [0, 0], sizes = [2, 10], strides = [1, 1]} : vector<2x20xf32> to vector<2x10xf32>
    %c0_10 = arith.constant 0 : index
    %c0_11 = arith.constant 0 : index
    %36 = vector.load %arg5[%c0_10, %c0_11] : memref<20x20xf32, #tpu.memory_space<vmem>>, vector<2x10xf32>
    tpu.vector_store %arg5[%c0_10, %c0_11], %35 {strides = array<i32>} : memref<20x20xf32, #tpu.memory_space<vmem>>, vector<2x10xf32>,
    %37 = vector.extract_strided_slice %34 {offsets = [0, 10], sizes = [2, 10], strides = [1, 1]} : vector<2x20xf32> to vector<2x10xf32>
    %c18 = arith.constant 18 : index
    %c10 = arith.constant 10 : index
    %38 = vector.load %arg5[%c18, %c10] : memref<20x20xf32, #tpu.memory_space<vmem>>, vector<2x10xf32>
    tpu.vector_store %arg5[%c18, %c10], %37 {strides = array<i32>} : memref<20x20xf32, #tpu.memory_space<vmem>>, vector<2x10xf32>,
    %39 = vector.extract_strided_slice %13 {offsets = [2, 0], sizes = [2, 80], strides = [1, 1]} : vector<20x80xf32> to vector<2x80xf32>
    %cst_12 = arith.constant dense<0.000000e+00> : vector<2x80xf32>
    %40 = tpu.matmul %34, %14, %cst_12 {dimension_numbers = #tpu.dot_dimension_numbers<[1], [0], [0], [1], [0, 0, 1, 1], [], []>} : vector<2x20xf32>, vector<20x80xf32>, vector<2x80xf32> -> vector<2x80xf32>
    %41 = arith.addf %39, %40 : vector<2x80xf32>
    %42 = arith.negf %41 : vector<2x80xf32>
    %43 = math.exp %42 : vector<2x80xf32>
    %cst_13 = arith.constant 1.000000e+00 : f32
    %44 = vector.broadcast %cst_13 : f32 to vector<2x80xf32>
    %45 = arith.addf %44, %43 : vector<2x80xf32>
    %46 = arith.divf %44, %45 : vector<2x80xf32>
    %47 = math.tanh %41 : vector<2x80xf32>
    %48 = vector.extract_strided_slice %46 {offsets = [0, 0], sizes = [2, 20], strides = [1, 1]} : vector<2x80xf32> to vector<2x20xf32>
    %49 = vector.extract_strided_slice %46 {offsets = [0, 20], sizes = [2, 20], strides = [1, 1]} : vector<2x80xf32> to vector<2x20xf32>
    %50 = vector.extract_strided_slice %47 {offsets = [0, 40], sizes = [2, 20], strides = [1, 1]} : vector<2x80xf32> to vector<2x20xf32>
    %51 = vector.extract_strided_slice %46 {offsets = [0, 60], sizes = [2, 20], strides = [1, 1]} : vector<2x80xf32> to vector<2x20xf32>
    %52 = arith.mulf %49, %32 : vector<2x20xf32>
    %53 = arith.mulf %48, %50 : vector<2x20xf32>
    %54 = arith.addf %52, %53 : vector<2x20xf32>
    %55 = math.tanh %54 : vector<2x20xf32>
    %56 = arith.mulf %51, %55 : vector<2x20xf32>
    %57 = vector.extract_strided_slice %56 {offsets = [0, 0], sizes = [2, 10], strides = [1, 1]} : vector<2x20xf32> to vector<2x10xf32>
    %c2 = arith.constant 2 : index
    %c0_14 = arith.constant 0 : index
    %58 = vector.load %arg5[%c2, %c0_14] : memref<20x20xf32, #tpu.memory_space<vmem>>, vector<2x10xf32>
    tpu.vector_store %arg5[%c2, %c0_14], %57 {strides = array<i32>} : memref<20x20xf32, #tpu.memory_space<vmem>>, vector<2x10xf32>,
    %59 = vector.extract_strided_slice %56 {offsets = [0, 10], sizes = [2, 10], strides = [1, 1]} : vector<2x20xf32> to vector<2x10xf32>
    %c16 = arith.constant 16 : index
    %c10_15 = arith.constant 10 : index
    %60 = vector.load %arg5[%c16, %c10_15] : memref<20x20xf32, #tpu.memory_space<vmem>>, vector<2x10xf32>
    tpu.vector_store %arg5[%c16, %c10_15], %59 {strides = array<i32>} : memref<20x20xf32, #tpu.memory_space<vmem>>, vector<2x10xf32>,
    %61 = vector.extract_strided_slice %13 {offsets = [4, 0], sizes = [2, 80], strides = [1, 1]} : vector<20x80xf32> to vector<2x80xf32>
    %cst_16 = arith.constant dense<0.000000e+00> : vector<2x80xf32>
    %62 = tpu.matmul %56, %14, %cst_16 {dimension_numbers = #tpu.dot_dimension_numbers<[1], [0], [0], [1], [0, 0, 1, 1], [], []>} : vector<2x20xf32>, vector<20x80xf32>, vector<2x80xf32> -> vector<2x80xf32>
    %63 = arith.addf %61, %62 : vector<2x80xf32>
    %64 = arith.negf %63 : vector<2x80xf32>
    %65 = math.exp %64 : vector<2x80xf32>
    %cst_17 = arith.constant 1.000000e+00 : f32
    %66 = vector.broadcast %cst_17 : f32 to vector<2x80xf32>
    %67 = arith.addf %66, %65 : vector<2x80xf32>
    %68 = arith.divf %66, %67 : vector<2x80xf32>
    %69 = math.tanh %63 : vector<2x80xf32>
    %70 = vector.extract_strided_slice %68 {offsets = [0, 0], sizes = [2, 20], strides = [1, 1]} : vector<2x80xf32> to vector<2x20xf32>
    %71 = vector.extract_strided_slice %68 {offsets = [0, 20], sizes = [2, 20], strides = [1, 1]} : vector<2x80xf32> to vector<2x20xf32>
    %72 = vector.extract_strided_slice %69 {offsets = [0, 40], sizes = [2, 20], strides = [1, 1]} : vector<2x80xf32> to vector<2x20xf32>
    %73 = vector.extract_strided_slice %68 {offsets = [0, 60], sizes = [2, 20], strides = [1, 1]} : vector<2x80xf32> to vector<2x20xf32>
    %74 = arith.mulf %71, %54 : vector<2x20xf32>
    %75 = arith.mulf %70, %72 : vector<2x20xf32>
    %76 = arith.addf %74, %75 : vector<2x20xf32>
    %77 = math.tanh %76 : vector<2x20xf32>
    %78 = arith.mulf %73, %77 : vector<2x20xf32>
    %79 = vector.extract_strided_slice %78 {offsets = [0, 0], sizes = [2, 10], strides = [1, 1]} : vector<2x20xf32> to vector<2x10xf32>
    %c4 = arith.constant 4 : index
    %c0_18 = arith.constant 0 : index
    %80 = vector.load %arg5[%c4, %c0_18] : memref<20x20xf32, #tpu.memory_space<vmem>>, vector<2x10xf32>
    tpu.vector_store %arg5[%c4, %c0_18], %79 {strides = array<i32>} : memref<20x20xf32, #tpu.memory_space<vmem>>, vector<2x10xf32>,
    %81 = vector.extract_strided_slice %78 {offsets = [0, 10], sizes = [2, 10], strides = [1, 1]} : vector<2x20xf32> to vector<2x10xf32>
    %c14 = arith.constant 14 : index
    %c10_19 = arith.constant 10 : index
    %82 = vector.load %arg5[%c14, %c10_19] : memref<20x20xf32, #tpu.memory_space<vmem>>, vector<2x10xf32>
    tpu.vector_store %arg5[%c14, %c10_19], %81 {strides = array<i32>} : memref<20x20xf32, #tpu.memory_space<vmem>>, vector<2x10xf32>,
    %83 = vector.extract_strided_slice %13 {offsets = [6, 0], sizes = [2, 80], strides = [1, 1]} : vector<20x80xf32> to vector<2x80xf32>
    %cst_20 = arith.constant dense<0.000000e+00> : vector<2x80xf32>
    %84 = tpu.matmul %78, %14, %cst_20 {dimension_numbers = #tpu.dot_dimension_numbers<[1], [0], [0], [1], [0, 0, 1, 1], [], []>} : vector<2x20xf32>, vector<20x80xf32>, vector<2x80xf32> -> vector<2x80xf32>
    %85 = arith.addf %83, %84 : vector<2x80xf32>
    %86 = arith.negf %85 : vector<2x80xf32>
    %87 = math.exp %86 : vector<2x80xf32>
    %cst_21 = arith.constant 1.000000e+00 : f32
    %88 = vector.broadcast %cst_21 : f32 to vector<2x80xf32>
    %89 = arith.addf %88, %87 : vector<2x80xf32>
    %90 = arith.divf %88, %89 : vector<2x80xf32>
    %91 = math.tanh %85 : vector<2x80xf32>
    %92 = vector.extract_strided_slice %90 {offsets = [0, 0], sizes = [2, 20], strides = [1, 1]} : vector<2x80xf32> to vector<2x20xf32>
    %93 = vector.extract_strided_slice %90 {offsets = [0, 20], sizes = [2, 20], strides = [1, 1]} : vector<2x80xf32> to vector<2x20xf32>
    %94 = vector.extract_strided_slice %91 {offsets = [0, 40], sizes = [2, 20], strides = [1, 1]} : vector<2x80xf32> to vector<2x20xf32>
    %95 = vector.extract_strided_slice %90 {offsets = [0, 60], sizes = [2, 20], strides = [1, 1]} : vector<2x80xf32> to vector<2x20xf32>
    %96 = arith.mulf %93, %76 : vector<2x20xf32>
    %97 = arith.mulf %92, %94 : vector<2x20xf32>
    %98 = arith.addf %96, %97 : vector<2x20xf32>
    %99 = math.tanh %98 : vector<2x20xf32>
    %100 = arith.mulf %95, %99 : vector<2x20xf32>
    %101 = vector.extract_strided_slice %100 {offsets = [0, 0], sizes = [2, 10], strides = [1, 1]} : vector<2x20xf32> to vector<2x10xf32>
    %c6 = arith.constant 6 : index
    %c0_22 = arith.constant 0 : index
    %102 = vector.load %arg5[%c6, %c0_22] : memref<20x20xf32, #tpu.memory_space<vmem>>, vector<2x10xf32>
    tpu.vector_store %arg5[%c6, %c0_22], %101 {strides = array<i32>} : memref<20x20xf32, #tpu.memory_space<vmem>>, vector<2x10xf32>,
    %103 = vector.extract_strided_slice %100 {offsets = [0, 10], sizes = [2, 10], strides = [1, 1]} : vector<2x20xf32> to vector<2x10xf32>
    %c12 = arith.constant 12 : index
    %c10_23 = arith.constant 10 : index
    %104 = vector.load %arg5[%c12, %c10_23] : memref<20x20xf32, #tpu.memory_space<vmem>>, vector<2x10xf32>
    tpu.vector_store %arg5[%c12, %c10_23], %103 {strides = array<i32>} : memref<20x20xf32, #tpu.memory_space<vmem>>, vector<2x10xf32>,
    %105 = vector.extract_strided_slice %13 {offsets = [8, 0], sizes = [2, 80], strides = [1, 1]} : vector<20x80xf32> to vector<2x80xf32>
    %cst_24 = arith.constant dense<0.000000e+00> : vector<2x80xf32>
    %106 = tpu.matmul %100, %14, %cst_24 {dimension_numbers = #tpu.dot_dimension_numbers<[1], [0], [0], [1], [0, 0, 1, 1], [], []>} : vector<2x20xf32>, vector<20x80xf32>, vector<2x80xf32> -> vector<2x80xf32>
    %107 = arith.addf %105, %106 : vector<2x80xf32>
    %108 = arith.negf %107 : vector<2x80xf32>
    %109 = math.exp %108 : vector<2x80xf32>
    %cst_25 = arith.constant 1.000000e+00 : f32
    %110 = vector.broadcast %cst_25 : f32 to vector<2x80xf32>
    %111 = arith.addf %110, %109 : vector<2x80xf32>
    %112 = arith.divf %110, %111 : vector<2x80xf32>
    %113 = math.tanh %107 : vector<2x80xf32>
    %114 = vector.extract_strided_slice %112 {offsets = [0, 0], sizes = [2, 20], strides = [1, 1]} : vector<2x80xf32> to vector<2x20xf32>
    %115 = vector.extract_strided_slice %112 {offsets = [0, 20], sizes = [2, 20], strides = [1, 1]} : vector<2x80xf32> to vector<2x20xf32>
    %116 = vector.extract_strided_slice %113 {offsets = [0, 40], sizes = [2, 20], strides = [1, 1]} : vector<2x80xf32> to vector<2x20xf32>
    %117 = vector.extract_strided_slice %112 {offsets = [0, 60], sizes = [2, 20], strides = [1, 1]} : vector<2x80xf32> to vector<2x20xf32>
    %118 = arith.mulf %115, %98 : vector<2x20xf32>
    %119 = arith.mulf %114, %116 : vector<2x20xf32>
    %120 = arith.addf %118, %119 : vector<2x20xf32>
    %121 = math.tanh %120 : vector<2x20xf32>
    %122 = arith.mulf %117, %121 : vector<2x20xf32>
    %123 = vector.extract_strided_slice %122 {offsets = [0, 0], sizes = [2, 10], strides = [1, 1]} : vector<2x20xf32> to vector<2x10xf32>
    %c8 = arith.constant 8 : index
    %c0_26 = arith.constant 0 : index
    %124 = vector.load %arg5[%c8, %c0_26] : memref<20x20xf32, #tpu.memory_space<vmem>>, vector<2x10xf32>
    tpu.vector_store %arg5[%c8, %c0_26], %123 {strides = array<i32>} : memref<20x20xf32, #tpu.memory_space<vmem>>, vector<2x10xf32>,
    %125 = vector.extract_strided_slice %122 {offsets = [0, 10], sizes = [2, 10], strides = [1, 1]} : vector<2x20xf32> to vector<2x10xf32>
    %c10_27 = arith.constant 10 : index
    %c10_28 = arith.constant 10 : index
    %126 = vector.load %arg5[%c10_27, %c10_28] : memref<20x20xf32, #tpu.memory_space<vmem>>, vector<2x10xf32>
    tpu.vector_store %arg5[%c10_27, %c10_28], %125 {strides = array<i32>} : memref<20x20xf32, #tpu.memory_space<vmem>>, vector<2x10xf32>,
    %127 = vector.extract_strided_slice %13 {offsets = [10, 0], sizes = [2, 80], strides = [1, 1]} : vector<20x80xf32> to vector<2x80xf32>
    %cst_29 = arith.constant dense<0.000000e+00> : vector<2x80xf32>
    %128 = tpu.matmul %122, %14, %cst_29 {dimension_numbers = #tpu.dot_dimension_numbers<[1], [0], [0], [1], [0, 0, 1, 1], [], []>} : vector<2x20xf32>, vector<20x80xf32>, vector<2x80xf32> -> vector<2x80xf32>
    %129 = arith.addf %127, %128 : vector<2x80xf32>
    %130 = arith.negf %129 : vector<2x80xf32>
    %131 = math.exp %130 : vector<2x80xf32>
    %cst_30 = arith.constant 1.000000e+00 : f32
    %132 = vector.broadcast %cst_30 : f32 to vector<2x80xf32>
    %133 = arith.addf %132, %131 : vector<2x80xf32>
    %134 = arith.divf %132, %133 : vector<2x80xf32>
    %135 = math.tanh %129 : vector<2x80xf32>
    %136 = vector.extract_strided_slice %134 {offsets = [0, 0], sizes = [2, 20], strides = [1, 1]} : vector<2x80xf32> to vector<2x20xf32>
    %137 = vector.extract_strided_slice %134 {offsets = [0, 20], sizes = [2, 20], strides = [1, 1]} : vector<2x80xf32> to vector<2x20xf32>
    %138 = vector.extract_strided_slice %135 {offsets = [0, 40], sizes = [2, 20], strides = [1, 1]} : vector<2x80xf32> to vector<2x20xf32>
    %139 = vector.extract_strided_slice %134 {offsets = [0, 60], sizes = [2, 20], strides = [1, 1]} : vector<2x80xf32> to vector<2x20xf32>
    %140 = arith.mulf %137, %120 : vector<2x20xf32>
    %141 = arith.mulf %136, %138 : vector<2x20xf32>
    %142 = arith.addf %140, %141 : vector<2x20xf32>
    %143 = math.tanh %142 : vector<2x20xf32>
    %144 = arith.mulf %139, %143 : vector<2x20xf32>
    %145 = vector.extract_strided_slice %144 {offsets = [0, 0], sizes = [2, 10], strides = [1, 1]} : vector<2x20xf32> to vector<2x10xf32>
    %c10_31 = arith.constant 10 : index
    %c0_32 = arith.constant 0 : index
    %146 = vector.load %arg5[%c10_31, %c0_32] : memref<20x20xf32, #tpu.memory_space<vmem>>, vector<2x10xf32>
    tpu.vector_store %arg5[%c10_31, %c0_32], %145 {strides = array<i32>} : memref<20x20xf32, #tpu.memory_space<vmem>>, vector<2x10xf32>,
    %147 = vector.extract_strided_slice %144 {offsets = [0, 10], sizes = [2, 10], strides = [1, 1]} : vector<2x20xf32> to vector<2x10xf32>
    %c8_33 = arith.constant 8 : index
    %c10_34 = arith.constant 10 : index
    %148 = vector.load %arg5[%c8_33, %c10_34] : memref<20x20xf32, #tpu.memory_space<vmem>>, vector<2x10xf32>
    tpu.vector_store %arg5[%c8_33, %c10_34], %147 {strides = array<i32>} : memref<20x20xf32, #tpu.memory_space<vmem>>, vector<2x10xf32>,
    %149 = vector.extract_strided_slice %13 {offsets = [12, 0], sizes = [2, 80], strides = [1, 1]} : vector<20x80xf32> to vector<2x80xf32>
    %cst_35 = arith.constant dense<0.000000e+00> : vector<2x80xf32>
    %150 = tpu.matmul %144, %14, %cst_35 {dimension_numbers = #tpu.dot_dimension_numbers<[1], [0], [0], [1], [0, 0, 1, 1], [], []>} : vector<2x20xf32>, vector<20x80xf32>, vector<2x80xf32> -> vector<2x80xf32>
    %151 = arith.addf %149, %150 : vector<2x80xf32>
    %152 = arith.negf %151 : vector<2x80xf32>
    %153 = math.exp %152 : vector<2x80xf32>
    %cst_36 = arith.constant 1.000000e+00 : f32
    %154 = vector.broadcast %cst_36 : f32 to vector<2x80xf32>
    %155 = arith.addf %154, %153 : vector<2x80xf32>
    %156 = arith.divf %154, %155 : vector<2x80xf32>
    %157 = math.tanh %151 : vector<2x80xf32>
    %158 = vector.extract_strided_slice %156 {offsets = [0, 0], sizes = [2, 20], strides = [1, 1]} : vector<2x80xf32> to vector<2x20xf32>
    %159 = vector.extract_strided_slice %156 {offsets = [0, 20], sizes = [2, 20], strides = [1, 1]} : vector<2x80xf32> to vector<2x20xf32>
    %160 = vector.extract_strided_slice %157 {offsets = [0, 40], sizes = [2, 20], strides = [1, 1]} : vector<2x80xf32> to vector<2x20xf32>
    %161 = vector.extract_strided_slice %156 {offsets = [0, 60], sizes = [2, 20], strides = [1, 1]} : vector<2x80xf32> to vector<2x20xf32>
    %162 = arith.mulf %159, %142 : vector<2x20xf32>
    %163 = arith.mulf %158, %160 : vector<2x20xf32>
    %164 = arith.addf %162, %163 : vector<2x20xf32>
    %165 = math.tanh %164 : vector<2x20xf32>
    %166 = arith.mulf %161, %165 : vector<2x20xf32>
    %167 = vector.extract_strided_slice %166 {offsets = [0, 0], sizes = [2, 10], strides = [1, 1]} : vector<2x20xf32> to vector<2x10xf32>
    %c12_37 = arith.constant 12 : index
    %c0_38 = arith.constant 0 : index
    %168 = vector.load %arg5[%c12_37, %c0_38] : memref<20x20xf32, #tpu.memory_space<vmem>>, vector<2x10xf32>
    tpu.vector_store %arg5[%c12_37, %c0_38], %167 {strides = array<i32>} : memref<20x20xf32, #tpu.memory_space<vmem>>, vector<2x10xf32>,
    %169 = vector.extract_strided_slice %166 {offsets = [0, 10], sizes = [2, 10], strides = [1, 1]} : vector<2x20xf32> to vector<2x10xf32>
    %c6_39 = arith.constant 6 : index
    %c10_40 = arith.constant 10 : index
    %170 = vector.load %arg5[%c6_39, %c10_40] : memref<20x20xf32, #tpu.memory_space<vmem>>, vector<2x10xf32>
    tpu.vector_store %arg5[%c6_39, %c10_40], %169 {strides = array<i32>} : memref<20x20xf32, #tpu.memory_space<vmem>>, vector<2x10xf32>,
    %171 = vector.extract_strided_slice %13 {offsets = [14, 0], sizes = [2, 80], strides = [1, 1]} : vector<20x80xf32> to vector<2x80xf32>
    %cst_41 = arith.constant dense<0.000000e+00> : vector<2x80xf32>
    %172 = tpu.matmul %166, %14, %cst_41 {dimension_numbers = #tpu.dot_dimension_numbers<[1], [0], [0], [1], [0, 0, 1, 1], [], []>} : vector<2x20xf32>, vector<20x80xf32>, vector<2x80xf32> -> vector<2x80xf32>
    %173 = arith.addf %171, %172 : vector<2x80xf32>
    %174 = arith.negf %173 : vector<2x80xf32>
    %175 = math.exp %174 : vector<2x80xf32>
    %cst_42 = arith.constant 1.000000e+00 : f32
    %176 = vector.broadcast %cst_42 : f32 to vector<2x80xf32>
    %177 = arith.addf %176, %175 : vector<2x80xf32>
    %178 = arith.divf %176, %177 : vector<2x80xf32>
    %179 = math.tanh %173 : vector<2x80xf32>
    %180 = vector.extract_strided_slice %178 {offsets = [0, 0], sizes = [2, 20], strides = [1, 1]} : vector<2x80xf32> to vector<2x20xf32>
    %181 = vector.extract_strided_slice %178 {offsets = [0, 20], sizes = [2, 20], strides = [1, 1]} : vector<2x80xf32> to vector<2x20xf32>
    %182 = vector.extract_strided_slice %179 {offsets = [0, 40], sizes = [2, 20], strides = [1, 1]} : vector<2x80xf32> to vector<2x20xf32>
    %183 = vector.extract_strided_slice %178 {offsets = [0, 60], sizes = [2, 20], strides = [1, 1]} : vector<2x80xf32> to vector<2x20xf32>
    %184 = arith.mulf %181, %164 : vector<2x20xf32>
    %185 = arith.mulf %180, %182 : vector<2x20xf32>
    %186 = arith.addf %184, %185 : vector<2x20xf32>
    %187 = math.tanh %186 : vector<2x20xf32>
    %188 = arith.mulf %183, %187 : vector<2x20xf32>
    %189 = vector.extract_strided_slice %188 {offsets = [0, 0], sizes = [2, 10], strides = [1, 1]} : vector<2x20xf32> to vector<2x10xf32>
    %c14_43 = arith.constant 14 : index
    %c0_44 = arith.constant 0 : index
    %190 = vector.load %arg5[%c14_43, %c0_44] : memref<20x20xf32, #tpu.memory_space<vmem>>, vector<2x10xf32>
    tpu.vector_store %arg5[%c14_43, %c0_44], %189 {strides = array<i32>} : memref<20x20xf32, #tpu.memory_space<vmem>>, vector<2x10xf32>,
    %191 = vector.extract_strided_slice %188 {offsets = [0, 10], sizes = [2, 10], strides = [1, 1]} : vector<2x20xf32> to vector<2x10xf32>
    %c4_45 = arith.constant 4 : index
    %c10_46 = arith.constant 10 : index
    %192 = vector.load %arg5[%c4_45, %c10_46] : memref<20x20xf32, #tpu.memory_space<vmem>>, vector<2x10xf32>
    tpu.vector_store %arg5[%c4_45, %c10_46], %191 {strides = array<i32>} : memref<20x20xf32, #tpu.memory_space<vmem>>, vector<2x10xf32>,
    %193 = vector.extract_strided_slice %13 {offsets = [16, 0], sizes = [2, 80], strides = [1, 1]} : vector<20x80xf32> to vector<2x80xf32>
    %cst_47 = arith.constant dense<0.000000e+00> : vector<2x80xf32>
    %194 = tpu.matmul %188, %14, %cst_47 {dimension_numbers = #tpu.dot_dimension_numbers<[1], [0], [0], [1], [0, 0, 1, 1], [], []>} : vector<2x20xf32>, vector<20x80xf32>, vector<2x80xf32> -> vector<2x80xf32>
    %195 = arith.addf %193, %194 : vector<2x80xf32>
    %196 = arith.negf %195 : vector<2x80xf32>
    %197 = math.exp %196 : vector<2x80xf32>
    %cst_48 = arith.constant 1.000000e+00 : f32
    %198 = vector.broadcast %cst_48 : f32 to vector<2x80xf32>
    %199 = arith.addf %198, %197 : vector<2x80xf32>
    %200 = arith.divf %198, %199 : vector<2x80xf32>
    %201 = math.tanh %195 : vector<2x80xf32>
    %202 = vector.extract_strided_slice %200 {offsets = [0, 0], sizes = [2, 20], strides = [1, 1]} : vector<2x80xf32> to vector<2x20xf32>
    %203 = vector.extract_strided_slice %200 {offsets = [0, 20], sizes = [2, 20], strides = [1, 1]} : vector<2x80xf32> to vector<2x20xf32>
    %204 = vector.extract_strided_slice %201 {offsets = [0, 40], sizes = [2, 20], strides = [1, 1]} : vector<2x80xf32> to vector<2x20xf32>
    %205 = vector.extract_strided_slice %200 {offsets = [0, 60], sizes = [2, 20], strides = [1, 1]} : vector<2x80xf32> to vector<2x20xf32>
    %206 = arith.mulf %203, %186 : vector<2x20xf32>
    %207 = arith.mulf %202, %204 : vector<2x20xf32>
    %208 = arith.addf %206, %207 : vector<2x20xf32>
    %209 = math.tanh %208 : vector<2x20xf32>
    %210 = arith.mulf %205, %209 : vector<2x20xf32>
    %211 = vector.extract_strided_slice %210 {offsets = [0, 0], sizes = [2, 10], strides = [1, 1]} : vector<2x20xf32> to vector<2x10xf32>
    %c16_49 = arith.constant 16 : index
    %c0_50 = arith.constant 0 : index
    %212 = vector.load %arg5[%c16_49, %c0_50] : memref<20x20xf32, #tpu.memory_space<vmem>>, vector<2x10xf32>
    tpu.vector_store %arg5[%c16_49, %c0_50], %211 {strides = array<i32>} : memref<20x20xf32, #tpu.memory_space<vmem>>, vector<2x10xf32>,
    %213 = vector.extract_strided_slice %210 {offsets = [0, 10], sizes = [2, 10], strides = [1, 1]} : vector<2x20xf32> to vector<2x10xf32>
    %c2_51 = arith.constant 2 : index
    %c10_52 = arith.constant 10 : index
    %214 = vector.load %arg5[%c2_51, %c10_52] : memref<20x20xf32, #tpu.memory_space<vmem>>, vector<2x10xf32>
    tpu.vector_store %arg5[%c2_51, %c10_52], %213 {strides = array<i32>} : memref<20x20xf32, #tpu.memory_space<vmem>>, vector<2x10xf32>,
    %215 = vector.extract_strided_slice %13 {offsets = [18, 0], sizes = [2, 80], strides = [1, 1]} : vector<20x80xf32> to vector<2x80xf32>
    %cst_53 = arith.constant dense<0.000000e+00> : vector<2x80xf32>
    %216 = tpu.matmul %210, %14, %cst_53 {dimension_numbers = #tpu.dot_dimension_numbers<[1], [0], [0], [1], [0, 0, 1, 1], [], []>} : vector<2x20xf32>, vector<20x80xf32>, vector<2x80xf32> -> vector<2x80xf32>
    %217 = arith.addf %215, %216 : vector<2x80xf32>
    %218 = arith.negf %217 : vector<2x80xf32>
    %219 = math.exp %218 : vector<2x80xf32>
    %cst_54 = arith.constant 1.000000e+00 : f32
    %220 = vector.broadcast %cst_54 : f32 to vector<2x80xf32>
    %221 = arith.addf %220, %219 : vector<2x80xf32>
    %222 = arith.divf %220, %221 : vector<2x80xf32>
    %223 = math.tanh %217 : vector<2x80xf32>
    %224 = vector.extract_strided_slice %222 {offsets = [0, 0], sizes = [2, 20], strides = [1, 1]} : vector<2x80xf32> to vector<2x20xf32>
    %225 = vector.extract_strided_slice %222 {offsets = [0, 20], sizes = [2, 20], strides = [1, 1]} : vector<2x80xf32> to vector<2x20xf32>
    %226 = vector.extract_strided_slice %223 {offsets = [0, 40], sizes = [2, 20], strides = [1, 1]} : vector<2x80xf32> to vector<2x20xf32>
    %227 = vector.extract_strided_slice %222 {offsets = [0, 60], sizes = [2, 20], strides = [1, 1]} : vector<2x80xf32> to vector<2x20xf32>
    %228 = arith.mulf %225, %208 : vector<2x20xf32>
    %229 = arith.mulf %224, %226 : vector<2x20xf32>
    %230 = arith.addf %228, %229 : vector<2x20xf32>
    %231 = math.tanh %230 : vector<2x20xf32>
    %232 = arith.mulf %227, %231 : vector<2x20xf32>
    %233 = vector.extract_strided_slice %232 {offsets = [0, 0], sizes = [2, 10], strides = [1, 1]} : vector<2x20xf32> to vector<2x10xf32>
    %c18_55 = arith.constant 18 : index
    %c0_56 = arith.constant 0 : index
    %234 = vector.load %arg5[%c18_55, %c0_56] : memref<20x20xf32, #tpu.memory_space<vmem>>, vector<2x10xf32>
    tpu.vector_store %arg5[%c18_55, %c0_56], %233 {strides = array<i32>} : memref<20x20xf32, #tpu.memory_space<vmem>>, vector<2x10xf32>,
    %235 = vector.extract_strided_slice %232 {offsets = [0, 10], sizes = [2, 10], strides = [1, 1]} : vector<2x20xf32> to vector<2x10xf32>
    %c0_57 = arith.constant 0 : index
    %c10_58 = arith.constant 10 : index
    %236 = vector.load %arg5[%c0_57, %c10_58] : memref<20x20xf32, #tpu.memory_space<vmem>>, vector<2x10xf32>
    tpu.vector_store %arg5[%c0_57, %c10_58], %235 {strides = array<i32>} : memref<20x20xf32, #tpu.memory_space<vmem>>, vector<2x10xf32>,
    %c0_59 = arith.constant 0 : index
    %c0_60 = arith.constant 0 : index
    %237 = vector.load %arg5[%c0_59, %c0_60] : memref<20x20xf32, #tpu.memory_space<vmem>>, vector<20x20xf32>
    %c0_61 = arith.constant 0 : index
    %c0_62 = arith.constant 0 : index
    %238 = vector.load %arg3[%c0_61, %c0_62] : memref<21x5xf32, #tpu.memory_space<vmem>>, vector<20x5xf32>
    %cst_63 = arith.constant dense<0.000000e+00> : vector<20x5xf32>
    %239 = tpu.matmul %237, %238, %cst_63 {dimension_numbers = #tpu.dot_dimension_numbers<[1], [0], [0], [1], [0, 0, 1, 1], [], []>} : vector<20x20xf32>, vector<20x5xf32>, vector<20x5xf32> -> vector<20x5xf32>
    %c20 = arith.constant 20 : index
    %c0_64 = arith.constant 0 : index
    %240 = vector.load %arg3[%c20, %c0_64] : memref<21x5xf32, #tpu.memory_space<vmem>>, vector<1x5xf32>
    %241 = vector.broadcast %240 : vector<1x5xf32> to vector<20x5xf32>
    %242 = arith.addf %239, %241 : vector<20x5xf32>
    %c0_65 = arith.constant 0 : index
    %c0_66 = arith.constant 0 : index
    %243 = vector.load %arg4[%c0_65, %c0_66] : memref<20x5xf32, #tpu.memory_space<vmem>>, vector<20x5xf32>
    tpu.vector_store %arg4[%c0_65, %c0_66], %242 {strides = array<i32>} : memref<20x5xf32, #tpu.memory_space<vmem>>, vector<20x5xf32>,
    return
  }
}

</mosaic_0001>

<bundles_post_ra>
// kernel: bilstm_crf_forward.1
= control target key start
LH: loop header
LB: loop body
LE: loop exit
PB: predicated region body
PF: predicated region fallthrough
CT: control target
= control target key end

     0   :  { %v1685_v0 = vmov 0   ;;  %v1686_v2 = vmov 0.0   ;;  %vm71_vm0 = vcmask 1043456   ;;  %v1687_v9 = vmov 1   ;;  %s1691_s29 = smov 40   ;;  %s1692_s30 = smov 68   ;;  %s2013_s0 = inlined_call_operand.vmem [shape: s32[20,2], index: 0, kind: input, shape index: {}]   ;;  %s2014_s2 = inlined_call_operand.vmem [shape: f32[20,80], index: 2, kind: input, shape index: {}]   ;;  %s2015_s1 = inlined_call_operand.vmem [shape: f32[20,80], index: 1, kind: input, shape index: {}]   ;;  %s2016_s3 = inlined_call_operand.vmem [shape: f32[21,5], index: 3, kind: input, shape index: {}]   ;;  %s2017_s4 = inlined_call_operand.vmem [shape: f32[20,5], index: 4, kind: output, shape index: {}]  }
   0x1   :  { %1599 = vset.pattern.permute.xlu0 %v1685_v0  ;;  %v19_v1 = vld [vmem:[%s2013_s0] sm:$0xff]  ;;  %1486 = vmatprep.subr.mxu1 %v1686_v2  ;;  %v1726_v3 = vld [vmem:[%s2014_s2 + $0x10] sm:$0xf]  ;;  %v1736_v5 = vld [vmem:[%s2014_s2 + $0x8] sm:$0xff]  ;;  %vm1688_vm1 = vmmov 0   ;;  %v17_v11 = vlaneseq  ;;  %vm61_vm4 = vcmask 162816  }
   0x2   :  { %v60_v4 = vld [vmem:[%s2015_s1 + $0x10] sm:$0xf]  ;;  %23 = vperm.xlu0 %1599, %v19_v1   ;;  %1487 = vmatpush3.msk.msra.mxu1 %vm71_vm0, %v1726_v3  ;;  %v34_v6 = vadd.s32 10, %v19_v1  ;;  %v59_v7 = vld [vmem:[%s2015_s1 + $0x8] sm:$0xff]  ;;  %v1748_v8 = vld [vmem:[%s2014_s2] sm:$0xff]  ;;  %s1690_s2 = smov 20  }
   0x3   :  { %1471 = vmatprep.subr.mxu0 %v1686_v2  ;;  %1488 = vmatprep.subr.mxu1 %v1686_v2  ;;  %v58_v10 = vld [vmem:[%s2015_s1] sm:$0xff]  ;;  %v1776_v13 = vand.u32 127, %v17_v11  ;;  %s1689_s1 = smov 88   ;;  %vm263_vm6 = vcmask 74752   ;;  %vm265_vm7 = vcmask 156752   ;;  %vm374_vm14 = vcmask 76802  }
   0x4   :  { %1472 = vmatpush3.msk.msra.mxu0 %vm71_vm0, %v60_v4  ;;  %1489 = vmatpush3.msra.mxu1 %v1736_v5  ;;  %vm376_vm15 = vcmask 158802  }
   0x5   :  { %1473 = vmatprep.subr.mxu0 %v1686_v2  ;;  %1490 = vmatprep.subr.mxu1 %v1686_v2 }
   0x6   :  { %1600 = vset.pattern.permute.xlu0 %v1687_v9  ;;  %1474 = vmatpush3.msra.mxu0 %v59_v7 }
   0x7   :  { %38 = vperm.xlu0 %1600, %v34_v6   ;;  %1491 = vmatpush3.msra.mxu1 %v1748_v8 }
   0x8   :  { %1492 = vmatprep.mubr.msk.f32.mxu1 %vm1688_vm1, %v1686_v2  ;;  %1475 = vmatprep.subr.mxu0 %v1686_v2 }
   0x9   :  { %1493 = vmatmul.mubr.f32.vlgmr.msra.gmra.mxu1 %v1686_v2  ;;  %1476 = vmatpush3.msra.mxu0 %v58_v10 }
   0xa   :  { %1477 = vmatprep.mubr.msk.f32.mxu0 %vm1688_vm1, %v1686_v2  ;;  %1495 = vmatprep.subr.mxu1 %v1686_v2 }
   0xb   :  { %1496 = vmatpush3.msk.msra.mxu1 %vm71_vm0, %v1726_v3  ;;  %1501 = vmatprep.mubr.msk.f32.mxu1 %vm1688_vm1, %v1686_v2 }
   0xc   :  { %1497 = vmatprep.subr.mxu1 %v1686_v2  ;;  %1602 = vset.pattern.permute.xlu1 %v1687_v9 }
   0xd   :  { %1498 = vmatpush3.msra.mxu1 %v1736_v5  ;;  %1601 = vset.pattern.permute.xlu0 %v1685_v0 }
   0xe   :  { %1499 = vmatprep.subr.mxu1 %v1686_v2  ;;  %1522 = vmatprep.subr.mxu0 %v1686_v2 }
   0xf   :  { %1500 = vmatpush3.msra.mxu1 %v1748_v8 }
  0x10   :  { %1504 = vmatprep.subr.mxu1 %v1686_v2 }
  0x7d   :  { %v24_v12 = vpop.permute.xlu0 %23 }
  0x7e   :  { %vm31_vm2 = vcmp.eq.s32.totalorder %v24_v12, %v1776_v13 }
  0x82   :  { %v39_v14 = vpop.permute.xlu0 %38 }
  0x83   :  { %vm46_vm3 = vcmp.eq.s32.totalorder %v39_v14, %v1776_v13 }
  0x84   :  { %vm49_vm5 = vmor %vm31_vm2, %vm46_vm3  ;;  %vm602_vm2 = vcmask 80902   ;;  %vm604_vm3 = vcmask 162902  }
  0x85   :  { %v1378_v15 = vsel %vm49_vm5, 1.0, %v1686_v2  ;;  %vm488_vm5 = vcmask 78852  }
  0x86   :  { %1478 = vmatmul.mubr.msk.f32.vlgmr.msra.gmra.mxu0 %vm61_vm4, %v1378_v15 }
  0x87   :  { %1480 = vmatprep.mubr.msk.f32.mxu0 %vm1688_vm1, %v1686_v2  ;;  %1523 = vmatpush3.msk.msra.mxu0 %vm71_vm0, %v1726_v3 }
  0x88   :  { %1524 = vmatprep.subr.mxu0 %v1686_v2 }
  0x89   :  { %1525 = vmatpush3.msra.mxu0 %v1736_v5 }
  0x8a   :  { %1526 = vmatprep.subr.mxu0 %v1686_v2 }
  0x8b   :  { %1527 = vmatpush3.msra.mxu0 %v1748_v8 }
  0x8c   :  { %1540 = vmatprep.subr.mxu0 %v1686_v2 }
  0xc9   :  { %v230_v16 = vpop.f32.mrf.mxu1 }
  0xcb   :  { %v1494_v17 = vpop.f32.mrf.mxu1 }
 0x146   :  { %v1791_v18 = vpop.f32.mrf.mxu0 }
 0x147   :  { %v234_v19 = vadd.f32 %v230_v16, %v1791_v18 }
 0x148   :  { %v1479_v20 = vpop.f32.mrf.mxu0 }
 0x149   :  { %1605 = vtanh.f32 %v234_v19  ;;  %v1386_v22 = vmul.f32 -1.442695, %v234_v19 }
 0x14b   :  { %1607 = vpow2.f32 %v1386_v22 }
 0x156   :  { %v1606_v21 = vpop.eup %1605 }
 0x157   :  { %244 = vrot.lane.b32.xlu1 %v1606_v21, %s1689_s1 }
 0x158   :  { %v1608_v23 = vpop.eup %1607 }
 0x159   :  { %v238_v24 = vadd.f32 1.0, %v1608_v23 }
 0x15b   :  { %1609 = vrcp.f32 %v238_v24 }
 0x168   :  { %v1610_v25 = vpop.eup %1609 }
 0x169   :  { %v242_v28 = vmul.f32 0.0, %v1610_v25 }
 0x1c9   :  { %v245_v26 = vpop.permute.xlu1 %244 }
 0x1ca   :  { %v247_v27 = vmul.f32 %v1610_v25, %v245_v26 }
 0x1cc   :  { %249 = vrot.lane.b32.xlu1 %v247_v27, %s1690_s2 }
 0x23e   :  { %v250_v29 = vpop.permute.xlu1 %249 }
 0x23f   :  { %v252_v30 = vadd.f32 %v250_v29, %v242_v28 }
 0x241   :  { %1611 = vtanh.f32 %v252_v30  ;;  %v351_v46 = vrot.slane %v252_v30, 6  ;;  %v20_v30 = vld [vmem:[%s2013_s0 + $0x8] sm:$0xff] }
 0x24e   :  { %v1612_v31 = vpop.eup %1611 }
 0x24f   :  { %255 = vrot.lane.b32.xlu1 %v1612_v31, %s1691_s29 }
 0x2c1   :  { %v256_v32 = vpop.permute.xlu1 %255 }
 0x2c2   :  { %v258_v33 = vmul.f32 %v1610_v25, %v256_v32 }
 0x2c4   :  { %260 = vrot.lane.b32.xlu0 %v258_v33, %s1692_s30 }
 0x336   :  { %v261_v34 = vpop.permute.xlu0 %260 }
 0x337   :  { %264 = vst.msk [vmem:[#allocation2] sm:$0x3] %vm263_vm6, %v261_v34  ;;  %1502 = vmatmul.mubr.msk.f32.vlgmr.msra.gmra.mxu1 %vm61_vm4, %v261_v34 }
 0x338   :  { %266 = vst.msk [vmem:[#allocation2 + $0x12] sm:$0x3] %vm265_vm7, %v261_v34  ;;  %1505 = vmatpush3.msk.msra.mxu1 %vm71_vm0, %v1726_v3  ;;  %1510 = vmatprep.mubr.msk.f32.mxu1 %vm1688_vm1, %v1686_v2 }
 0x339   :  { %1506 = vmatprep.subr.mxu1 %v1686_v2 }
 0x33a   :  { %1507 = vmatpush3.msra.mxu1 %v1736_v5 }
 0x33b   :  { %1508 = vmatprep.subr.mxu1 %v1686_v2 }
 0x33c   :  { %1509 = vmatpush3.msra.mxu1 %v1748_v8 }
 0x33d   :  { %1513 = vmatprep.subr.mxu1 %v1686_v2 }
 0x3f7   :  { %v335_v35 = vpop.f32.mrf.mxu1 }
 0x3f8   :  { %v340_v36 = vrot.slane %v335_v35, 6 }
 0x3f9   :  { %v1503_v37 = vpop.f32.mrf.mxu1 }
 0x3fa   :  { %v342_v38 = vadd.f32 %v340_v36, %v1791_v18  ;;  %v35_v37 = vadd.s32 10, %v20_v30 }
 0x3fc   :  { %1613 = vtanh.f32 %v342_v38  ;;  %v1389_v40 = vmul.f32 -1.442695, %v342_v38 }
 0x3fe   :  { %1615 = vpow2.f32 %v1389_v40 }
 0x409   :  { %v1614_v39 = vpop.eup %1613 }
 0x40a   :  { %355 = vrot.lane.b32.xlu1 %v1614_v39, %s1689_s1 }
 0x40b   :  { %v1616_v41 = vpop.eup %1615 }
 0x40c   :  { %v346_v42 = vadd.f32 1.0, %v1616_v41 }
 0x40e   :  { %1617 = vrcp.f32 %v346_v42 }
 0x41b   :  { %v1618_v43 = vpop.eup %1617 }
 0x41c   :  { %v353_v47 = vmul.f32 %v1618_v43, %v351_v46 }
 0x47c   :  { %v356_v44 = vpop.permute.xlu1 %355 }
 0x47d   :  { %v358_v45 = vmul.f32 %v1618_v43, %v356_v44 }
 0x47f   :  { %360 = vrot.lane.b32.xlu0 %v358_v45, %s1690_s2 }
 0x4f1   :  { %v361_v48 = vpop.permute.xlu0 %360 }
 0x4f2   :  { %v363_v49 = vadd.f32 %v361_v48, %v353_v47 }
 0x4f4   :  { %1619 = vtanh.f32 %v363_v49  ;;  %v465_v6 = vrot.slane %v363_v49, 6 }
 0x501   :  { %v1620_v50 = vpop.eup %1619 }
 0x502   :  { %366 = vrot.lane.b32.xlu1 %v1620_v50, %s1691_s29 }
 0x574   :  { %v367_v51 = vpop.permute.xlu1 %366 }
 0x575   :  { %v1814_v52 = vmul.f32 %v1618_v43, %v367_v51 }
 0x577   :  { %v378_v53 = vrot.slane %v1814_v52, 2 }
 0x579   :  { %379 = vrot.lane.b32.xlu0 %v378_v53, %s1692_s30 }
 0x5eb   :  { %v380_v54 = vpop.permute.xlu0 %379 }
 0x5ec   :  { %1511 = vmatmul.mubr.msk.f32.vlgmr.msra.gmra.mxu1 %vm61_vm4, %v380_v54 }
 0x5ed   :  { %1514 = vmatpush3.msk.msra.mxu1 %vm71_vm0, %v1726_v3  ;;  %1519 = vmatprep.mubr.msk.f32.mxu1 %vm1688_vm1, %v1686_v2 }
 0x5ee   :  { %1515 = vmatprep.subr.mxu1 %v1686_v2 }
 0x5ef   :  { %1516 = vmatpush3.msra.mxu1 %v1736_v5 }
 0x5f0   :  { %1517 = vmatprep.subr.mxu1 %v1686_v2 }
 0x5f1   :  { %1518 = vmatpush3.msra.mxu1 %v1748_v8 }
 0x5f2   :  { %1531 = vmatprep.subr.mxu1 %v1686_v2 }
 0x6ac   :  { %v449_v55 = vpop.f32.mrf.mxu1 }
 0x6ad   :  { %v454_v56 = vrot.slane %v449_v55, 4 }
 0x6ae   :  { %v1512_v57 = vpop.f32.mrf.mxu1 }
 0x6af   :  { %v456_v58 = vadd.f32 %v454_v56, %v1791_v18 }
 0x6b1   :  { %1621 = vtanh.f32 %v456_v58  ;;  %v1392_v60 = vmul.f32 -1.442695, %v456_v58 }
 0x6b3   :  { %1623 = vpow2.f32 %v1392_v60 }
 0x6be   :  { %v1622_v59 = vpop.eup %1621 }
 0x6bf   :  { %469 = vrot.lane.b32.xlu1 %v1622_v59, %s1689_s1 }
 0x6c0   :  { %v1624_v61 = vpop.eup %1623 }
 0x6c1   :  { %v460_v62 = vadd.f32 1.0, %v1624_v61 }
 0x6c3   :  { %1625 = vrcp.f32 %v460_v62 }
 0x6d0   :  { %v1626_v63 = vpop.eup %1625 }
 0x6d1   :  { %v467_v7 = vmul.f32 %v1626_v63, %v465_v6 }
 0x731   :  { %v470_v1 = vpop.permute.xlu1 %469 }
 0x732   :  { %v472_v4 = vmul.f32 %v1626_v63, %v470_v1 }
 0x734   :  { %474 = vrot.lane.b32.xlu0 %v472_v4, %s1690_s2 }
 0x7a6   :  { %v475_v10 = vpop.permute.xlu0 %474 }
 0x7a7   :  { %v477_v11 = vadd.f32 %v475_v10, %v467_v7 }
 0x7a9   :  { %1627 = vtanh.f32 %v477_v11  ;;  %v579_v32 = vrot.slane %v477_v11, 6 }
 0x7b6   :  { %v1628_v12 = vpop.eup %1627 }
 0x7b7   :  { %480 = vrot.lane.b32.xlu1 %v1628_v12, %s1691_s29 }
 0x829   :  { %v481_v14 = vpop.permute.xlu1 %480 }
 0x82a   :  { %v1832_v15 = vmul.f32 %v1626_v63, %v481_v14 }
 0x82c   :  { %v492_v16 = vrot.slane %v1832_v15, 4 }
 0x82e   :  { %493 = vrot.lane.b32.xlu0 %v492_v16, %s1692_s30 }
 0x8a0   :  { %v494_v17 = vpop.permute.xlu0 %493 }
 0x8a1   :  { %1520 = vmatmul.mubr.msk.f32.vlgmr.msra.gmra.mxu1 %vm61_vm4, %v494_v17 }
 0x8a2   :  { %1532 = vmatpush3.msk.msra.mxu1 %vm71_vm0, %v1726_v3  ;;  %1537 = vmatprep.mubr.msk.f32.mxu1 %vm1688_vm1, %v1686_v2 }
 0x8a3   :  { %1533 = vmatprep.subr.mxu1 %v1686_v2 }
 0x8a4   :  { %1534 = vmatpush3.msra.mxu1 %v1736_v5 }
 0x8a5   :  { %1535 = vmatprep.subr.mxu1 %v1686_v2 }
 0x8a6   :  { %1536 = vmatpush3.msra.mxu1 %v1748_v8 }
 0x8a7   :  { %1549 = vmatprep.subr.mxu1 %v1686_v2 }
 0x961   :  { %v563_v19 = vpop.f32.mrf.mxu1 }
 0x962   :  { %v568_v20 = vrot.slane %v563_v19, 2 }
 0x963   :  { %v1521_v21 = vpop.f32.mrf.mxu1 }
 0x964   :  { %v570_v22 = vadd.f32 %v568_v20, %v1791_v18  ;;  %v21_v18 = vld [vmem:[%s2013_s0 + $0x10] sm:$0xf] }
 0x965   :  { %v36_v31 = vadd.s32 10, %v21_v18 }
 0x966   :  { %1629 = vtanh.f32 %v570_v22  ;;  %v1395_v24 = vmul.f32 -1.442695, %v570_v22 }
 0x968   :  { %1631 = vpow2.f32 %v1395_v24 }
 0x973   :  { %v1630_v23 = vpop.eup %1629 }
 0x974   :  { %583 = vrot.lane.b32.xlu1 %v1630_v23, %s1689_s1 }
 0x975   :  { %v1632_v25 = vpop.eup %1631 }
 0x976   :  { %v574_v26 = vadd.f32 1.0, %v1632_v25 }
 0x978   :  { %1633 = vrcp.f32 %v574_v26 }
 0x985   :  { %v1634_v27 = vpop.eup %1633 }
 0x986   :  { %v581_v33 = vmul.f32 %v1634_v27, %v579_v32 }
 0x9e6   :  { %v584_v28 = vpop.permute.xlu1 %583 }
 0x9e7   :  { %v586_v29 = vmul.f32 %v1634_v27, %v584_v28 }
 0x9e9   :  { %588 = vrot.lane.b32.xlu0 %v586_v29, %s1690_s2 }
 0x9ed   :  { %26 = vperm.xlu0 %1601, %v20_v30  }
 0x9f1   :  { %1604 = vset.pattern.permute.xlu0 %v1687_v9 }
 0x9f2   :  { %44 = vperm.xlu0 %1604, %v36_v31  }
 0xa5b   :  { %v589_v34 = vpop.permute.xlu0 %588 }
 0xa5c   :  { %v591_v35 = vadd.f32 %v589_v34, %v581_v33 }
 0xa5e   :  { %1635 = vtanh.f32 %v591_v35  ;;  %v690_v60 = vrot.slane %v591_v35, 6 }
 0xa68   :  { %v27_v40 = vpop.permute.xlu0 %26 }
 0xa69   :  { %vm32_vm8 = vcmp.eq.s32.totalorder %v27_v40, %v1776_v13 }
 0xa6b   :  { %v1636_v36 = vpop.eup %1635 }
 0xa6c   :  { %594 = vrot.lane.b32.xlu1 %v1636_v36, %s1691_s29 }
 0xa6d   :  { %v45_v42 = vpop.permute.xlu0 %44 }
 0xa6e   :  { %vm48_vm11 = vcmp.eq.s32.totalorder %v45_v42, %v1776_v13 }
 0xa70   :  { %41 = vperm.xlu1 %1602, %v35_v37  }
 0xa74   :  { %1603 = vset.pattern.permute.xlu1 %v1685_v0 }
 0xa75   :  { %29 = vperm.xlu1 %1603, %v21_v18  }
 0xade   :  { %v595_v9 = vpop.permute.xlu1 %594 }
 0xadf   :  { %v1858_v38 = vmul.f32 %v1634_v27, %v595_v9 }
 0xae1   :  { %v606_v39 = vrot.slane %v1858_v38, 6 }
 0xae3   :  { %607 = vrot.lane.b32.xlu1 %v606_v39, %s1692_s30 }
 0xaeb   :  { %v42_v41 = vpop.permute.xlu1 %41 }
 0xaec   :  { %vm47_vm9 = vcmp.eq.s32.totalorder %v42_v41, %v1776_v13 }
 0xaed   :  { %vm50_vm10 = vmor %vm32_vm8, %vm47_vm9 }
 0xaee   :  { %v1379_v43 = vsel %vm50_vm10, 1.0, %v1686_v2 }
 0xaef   :  { %1481 = vmatmul.mubr.msk.f32.gmra.mxu0 %vm61_vm4, %v1379_v43 }
 0xaf0   :  { %v30_v0 = vpop.permute.xlu1 %29  ;;  %1483 = vmatprep.mubr.msk.f32.mxu0 %vm1688_vm1, %v1686_v2 }
 0xaf1   :  { %vm33_vm12 = vcmp.eq.s32.totalorder %v30_v0, %v1776_v13 }
 0xaf2   :  { %vm51_vm13 = vmor %vm33_vm12, %vm48_vm11 }
 0xaf3   :  { %v1380_v44 = vsel %vm51_vm13, 1.0, %v1686_v2 }
 0xaf4   :  { %1484 = vmatmul.mubr.msk.f32.gmra.mxu0 %vm61_vm4, %v1380_v44 }
 0xaf5   :  { %1528 = vmatprep.mubr.msk.f32.mxu0 %vm1688_vm1, %v1686_v2 }
 0xb55   :  { %v608_v45 = vpop.permute.xlu1 %607 }
 0xb56   :  { %1529 = vmatmul.mubr.msk.f32.vlgmr.msra.gmra.mxu0 %vm61_vm4, %v608_v45 }
 0xb57   :  { %1541 = vmatpush3.msk.msra.mxu0 %vm71_vm0, %v1726_v3  ;;  %1546 = vmatprep.mubr.msk.f32.mxu0 %vm1688_vm1, %v1686_v2 }
 0xb58   :  { %1542 = vmatprep.subr.mxu0 %v1686_v2 }
 0xb59   :  { %1543 = vmatpush3.msra.mxu0 %v1736_v5 }
 0xb5a   :  { %1544 = vmatprep.subr.mxu0 %v1686_v2 }
 0xb5b   :  { %1545 = vmatpush3.msra.mxu0 %v1748_v8 }
 0xb5c   :  { %1558 = vmatprep.subr.mxu0 %v1686_v2 }
 0xbaf   :  { %v1884_v13 = vpop.f32.mrf.mxu0 }
 0xbb1   :  { %v1482_v46 = vpop.f32.mrf.mxu0 }
 0xbb4   :  { %v1886_v47 = vpop.f32.mrf.mxu0 }
 0xbb6   :  { %v1485_v48 = vpop.f32.mrf.mxu0 }
 0xc16   :  { %v677_v49 = vpop.f32.mrf.mxu0 }
 0xc17   :  { %v681_v50 = vadd.f32 %v677_v49, %v1884_v13 }
 0xc18   :  { %v1530_v51 = vpop.f32.mrf.mxu0 }
 0xc19   :  { %1637 = vtanh.f32 %v681_v50  ;;  %v1398_v54 = vmul.f32 -1.442695, %v681_v50 }
 0xc1b   :  { %1639 = vpow2.f32 %v1398_v54 }
 0xc26   :  { %v1638_v53 = vpop.eup %1637 }
 0xc27   :  { %694 = vrot.lane.b32.xlu1 %v1638_v53, %s1689_s1 }
 0xc28   :  { %v1640_v55 = vpop.eup %1639 }
 0xc29   :  { %v685_v56 = vadd.f32 1.0, %v1640_v55 }
 0xc2b   :  { %1641 = vrcp.f32 %v685_v56 }
 0xc38   :  { %v1642_v57 = vpop.eup %1641 }
 0xc39   :  { %v692_v61 = vmul.f32 %v1642_v57, %v690_v60 }
 0xc99   :  { %v695_v58 = vpop.permute.xlu1 %694 }
 0xc9a   :  { %v697_v59 = vmul.f32 %v1642_v57, %v695_v58 }
 0xc9c   :  { %699 = vrot.lane.b32.xlu0 %v697_v59, %s1690_s2 }
 0xd0e   :  { %v700_v62 = vpop.permute.xlu0 %699 }
 0xd0f   :  { %v702_v63 = vadd.f32 %v700_v62, %v692_v61 }
 0xd11   :  { %1643 = vtanh.f32 %v702_v63  ;;  %v799_v24 = vrot.slane %v702_v63, 6 }
 0xd1e   :  { %v1644_v1 = vpop.eup %1643 }
 0xd1f   :  { %705 = vrot.lane.b32.xlu1 %v1644_v1, %s1691_s29 }
 0xd91   :  { %v706_v4 = vpop.permute.xlu1 %705 }
 0xd92   :  { %v708_v6 = vmul.f32 %v1642_v57, %v706_v4 }
 0xd94   :  { %710 = vrot.lane.b32.xlu0 %v708_v6, %s1692_s30 }
 0xe06   :  { %v711_v7 = vpop.permute.xlu0 %710 }
 0xe07   :  { %713 = vst.msk [vmem:[#allocation2 + $0x8] sm:$0x3] %vm263_vm6, %v711_v7  ;;  %1538 = vmatmul.mubr.msk.f32.vlgmr.msra.gmra.mxu1 %vm61_vm4, %v711_v7 }
 0xe08   :  { %714 = vst.msk [vmem:[#allocation2 + $0xa] sm:$0x3] %vm265_vm7, %v711_v7  ;;  %1550 = vmatpush3.msk.msra.mxu1 %vm71_vm0, %v1726_v3  ;;  %1555 = vmatprep.mubr.msk.f32.mxu1 %vm1688_vm1, %v1686_v2 }
 0xe09   :  { %1551 = vmatprep.subr.mxu1 %v1686_v2 }
 0xe0a   :  { %1552 = vmatpush3.msra.mxu1 %v1736_v5 }
 0xe0b   :  { %1553 = vmatprep.subr.mxu1 %v1686_v2 }
 0xe0c   :  { %1554 = vmatpush3.msra.mxu1 %v1748_v8 }
 0xe0d   :  { %1567 = vmatprep.subr.mxu1 %v1686_v2 }
 0xec7   :  { %v783_v10 = vpop.f32.mrf.mxu1 }
 0xec8   :  { %v788_v11 = vrot.slane %v783_v10, 6 }
 0xec9   :  { %v1539_v12 = vpop.f32.mrf.mxu1 }
 0xeca   :  { %v790_v14 = vadd.f32 %v788_v11, %v1884_v13 }
 0xecc   :  { %1645 = vtanh.f32 %v790_v14  ;;  %v1401_v17 = vmul.f32 -1.442695, %v790_v14 }
 0xece   :  { %1647 = vpow2.f32 %v1401_v17 }
 0xed9   :  { %v1646_v16 = vpop.eup %1645 }
 0xeda   :  { %803 = vrot.lane.b32.xlu1 %v1646_v16, %s1689_s1 }
 0xedb   :  { %v1648_v19 = vpop.eup %1647 }
 0xedc   :  { %v794_v20 = vadd.f32 1.0, %v1648_v19 }
 0xede   :  { %1649 = vrcp.f32 %v794_v20 }
 0xeeb   :  { %v1650_v21 = vpop.eup %1649 }
 0xeec   :  { %v801_v25 = vmul.f32 %v1650_v21, %v799_v24 }
 0xf4c   :  { %v804_v22 = vpop.permute.xlu1 %803 }
 0xf4d   :  { %v806_v23 = vmul.f32 %v1650_v21, %v804_v22 }
 0xf4f   :  { %808 = vrot.lane.b32.xlu0 %v806_v23, %s1690_s2 }
 0xfc1   :  { %v809_v26 = vpop.permute.xlu0 %808 }
 0xfc2   :  { %v811_v27 = vadd.f32 %v809_v26, %v801_v25 }
 0xfc4   :  { %1651 = vtanh.f32 %v811_v27  ;;  %v911_v43 = vrot.slane %v811_v27, 6 }
 0xfd1   :  { %v1652_v28 = vpop.eup %1651 }
 0xfd2   :  { %814 = vrot.lane.b32.xlu1 %v1652_v28, %s1691_s29 }
0x1044   :  { %v815_v29 = vpop.permute.xlu1 %814 }
0x1045   :  { %v1909_v30 = vmul.f32 %v1650_v21, %v815_v29 }
0x1047   :  { %v824_v18 = vrot.slane %v1909_v30, 2 }
0x1049   :  { %825 = vrot.lane.b32.xlu0 %v824_v18, %s1692_s30 }
0x10bb   :  { %v826_v31 = vpop.permute.xlu0 %825 }
0x10bc   :  { %1547 = vmatmul.mubr.msk.f32.vlgmr.msra.gmra.mxu0 %vm61_vm4, %v826_v31 }
0x10bd   :  { %1559 = vmatpush3.msk.msra.mxu0 %vm71_vm0, %v1726_v3  ;;  %1564 = vmatprep.mubr.msk.f32.mxu0 %vm1688_vm1, %v1686_v2 }
0x10be   :  { %1560 = vmatprep.subr.mxu0 %v1686_v2 }
0x10bf   :  { %1561 = vmatpush3.msra.mxu0 %v1736_v5 }
0x10c0   :  { %1562 = vmatprep.subr.mxu0 %v1686_v2 }
0x10c1   :  { %1563 = vmatpush3.msra.mxu0 %v1748_v8 }
0x10c2   :  { %1576 = vmatprep.subr.mxu0 %v1686_v2 }
0x117c   :  { %v895_v32 = vpop.f32.mrf.mxu0 }
0x117d   :  { %v900_v33 = vrot.slane %v895_v32, 4 }
0x117e   :  { %v1548_v34 = vpop.f32.mrf.mxu0 }
0x117f   :  { %v902_v35 = vadd.f32 %v900_v33, %v1884_v13 }
0x1181   :  { %1653 = vtanh.f32 %v902_v35  ;;  %v1404_v37 = vmul.f32 -1.442695, %v902_v35 }
0x1183   :  { %1655 = vpow2.f32 %v1404_v37 }
0x118e   :  { %v1654_v36 = vpop.eup %1653 }
0x118f   :  { %915 = vrot.lane.b32.xlu1 %v1654_v36, %s1689_s1 }
0x1190   :  { %v1656_v9 = vpop.eup %1655 }
0x1191   :  { %v906_v39 = vadd.f32 1.0, %v1656_v9 }
0x1193   :  { %1657 = vrcp.f32 %v906_v39 }
0x11a0   :  { %v1658_v40 = vpop.eup %1657 }
0x11a1   :  { %v913_v0 = vmul.f32 %v1658_v40, %v911_v43 }
0x1201   :  { %v916_v41 = vpop.permute.xlu1 %915 }
0x1202   :  { %v918_v42 = vmul.f32 %v1658_v40, %v916_v41 }
0x1204   :  { %920 = vrot.lane.b32.xlu0 %v918_v42, %s1690_s2 }
0x1276   :  { %v921_v44 = vpop.permute.xlu0 %920 }
0x1277   :  { %v923_v45 = vadd.f32 %v921_v44, %v913_v0 }
0x1279   :  { %1659 = vtanh.f32 %v923_v45 }
0x1286   :  { %v1660_v46 = vpop.eup %1659 }
0x1287   :  { %926 = vrot.lane.b32.xlu1 %v1660_v46, %s1691_s29 }
0x12f9   :  { %v927_v48 = vpop.permute.xlu1 %926 }
0x12fa   :  { %v1927_v49 = vmul.f32 %v1658_v40, %v927_v48  ;;  %v1271_v48 = vld [vmem:[%s2016_s3 + $0x10] sm:$0xf] }
0x12fc   :  { %v936_v50 = vrot.slane %v1927_v49, 4 }
0x12fe   :  { %937 = vrot.lane.b32.xlu0 %v936_v50, %s1692_s30  ;;  %v1270_v50 = vld [vmem:[%s2016_s3 + $0x8] sm:$0xff] }
0x1370   :  { %v938_v51 = vpop.permute.xlu0 %937 }
0x1371   :  { %1556 = vmatmul.mubr.msk.f32.vlgmr.msra.gmra.mxu1 %vm61_vm4, %v938_v51  ;;  %v1269_v51 = vld [vmem:[%s2016_s3] sm:$0xff] }
0x1372   :  { %1568 = vmatpush3.msk.msra.mxu1 %vm71_vm0, %v1726_v3  ;;  %1573 = vmatprep.mubr.msk.f32.mxu1 %vm1688_vm1, %v1686_v2 }
0x1373   :  { %1569 = vmatprep.subr.mxu1 %v1686_v2 }
0x1374   :  { %1570 = vmatpush3.msra.mxu1 %v1736_v5 }
0x1375   :  { %1571 = vmatprep.subr.mxu1 %v1686_v2 }
0x1376   :  { %1572 = vmatpush3.msra.mxu1 %v1748_v8  ;;  %v1023_v8 = vrot.slane %v923_v45, 6 }
0x1431   :  { %v1007_v53 = vpop.f32.mrf.mxu1 }
0x1432   :  { %v1012_v54 = vrot.slane %v1007_v53, 2 }
0x1433   :  { %v1557_v55 = vpop.f32.mrf.mxu1 }
0x1434   :  { %v1014_v56 = vadd.f32 %v1012_v54, %v1884_v13 }
0x1436   :  { %1661 = vtanh.f32 %v1014_v56  ;;  %v1407_v3 = vmul.f32 -1.442695, %v1014_v56 }
0x1438   :  { %1663 = vpow2.f32 %v1407_v3 }
0x1443   :  { %v1662_v57 = vpop.eup %1661 }
0x1444   :  { %1027 = vrot.lane.b32.xlu1 %v1662_v57, %s1689_s1 }
0x1445   :  { %v1664_v58 = vpop.eup %1663 }
0x1446   :  { %v1018_v59 = vadd.f32 1.0, %v1664_v58  ;;  %v1414_v58 = vld [vmem:[%s2016_s3 + $0x14] ss:$0 sm:$0xff] }
0x1448   :  { %1665 = vrcp.f32 %v1018_v59 }
0x1455   :  { %v1666_v60 = vpop.eup %1665 }
0x1456   :  { %v1025_v62 = vmul.f32 %v1666_v60, %v1023_v8 }
0x14b6   :  { %v1028_v5 = vpop.permute.xlu1 %1027 }
0x14b7   :  { %v1030_v61 = vmul.f32 %v1666_v60, %v1028_v5 }
0x14b9   :  { %1032 = vrot.lane.b32.xlu0 %v1030_v61, %s1690_s2 }
0x152b   :  { %v1033_v63 = vpop.permute.xlu0 %1032 }
0x152c   :  { %v1035_v1 = vadd.f32 %v1033_v63, %v1025_v62 }
0x152e   :  { %1667 = vtanh.f32 %v1035_v1  ;;  %v1132_v24 = vrot.slane %v1035_v1, 6 }
0x153b   :  { %v1668_v13 = vpop.eup %1667 }
0x153c   :  { %1038 = vrot.lane.b32.xlu1 %v1668_v13, %s1691_s29 }
0x15ae   :  { %v1039_v4 = vpop.permute.xlu1 %1038 }
0x15af   :  { %v1041_v6 = vmul.f32 %v1666_v60, %v1039_v4 }
0x15b1   :  { %v1048_v7 = vrot.slane %v1041_v6, 6 }
0x15b3   :  { %1049 = vrot.lane.b32.xlu0 %v1048_v7, %s1692_s30 }
0x1625   :  { %v1050_v10 = vpop.permute.xlu0 %1049 }
0x1626   :  { %1565 = vmatmul.mubr.msk.f32.vlgmr.msra.gmra.mxu0 %vm61_vm4, %v1050_v10 }
0x1627   :  { %1582 = vmatprep.mubr.msk.f32.mxu0 %vm1688_vm1, %v1686_v2  ;;  %1577 = vmatpush3.msk.msra.mxu0 %vm71_vm0, %v1271_v48  ;;  %vm1369_vm0 = vcmask 39936  }
0x1628   :  { %1578 = vmatprep.subr.mxu0 %v1686_v2 }
0x1629   :  { %1579 = vmatpush3.msra.mxu0 %v1270_v50 }
0x162a   :  { %1580 = vmatprep.subr.mxu0 %v1686_v2 }
0x162b   :  { %1581 = vmatpush3.msra.mxu0 %v1269_v51 }
0x16e6   :  { %v1119_v11 = vpop.f32.mrf.mxu0 }
0x16e7   :  { %v1123_v12 = vadd.f32 %v1119_v11, %v1886_v47 }
0x16e8   :  { %v1566_v14 = vpop.f32.mrf.mxu0 }
0x16e9   :  { %1669 = vtanh.f32 %v1123_v12  ;;  %v1410_v17 = vmul.f32 -1.442695, %v1123_v12 }
0x16eb   :  { %1671 = vpow2.f32 %v1410_v17 }
0x16f6   :  { %v1670_v16 = vpop.eup %1669 }
0x16f7   :  { %1136 = vrot.lane.b32.xlu1 %v1670_v16, %s1689_s1 }
0x16f8   :  { %v1672_v19 = vpop.eup %1671 }
0x16f9   :  { %v1127_v20 = vadd.f32 1.0, %v1672_v19 }
0x16fb   :  { %1673 = vrcp.f32 %v1127_v20 }
0x1708   :  { %v1674_v21 = vpop.eup %1673 }
0x1709   :  { %v1134_v25 = vmul.f32 %v1674_v21, %v1132_v24 }
0x1769   :  { %v1137_v22 = vpop.permute.xlu1 %1136 }
0x176a   :  { %v1139_v23 = vmul.f32 %v1674_v21, %v1137_v22 }
0x176c   :  { %1141 = vrot.lane.b32.xlu0 %v1139_v23, %s1690_s2 }
0x17de   :  { %v1142_v26 = vpop.permute.xlu0 %1141 }
0x17df   :  { %v1144_v27 = vadd.f32 %v1142_v26, %v1134_v25 }
0x17e1   :  { %1675 = vtanh.f32 %v1144_v27 }
0x17ee   :  { %v1676_v28 = vpop.eup %1675 }
0x17ef   :  { %1147 = vrot.lane.b32.xlu1 %v1676_v28, %s1691_s29 }
0x1861   :  { %v1148_v29 = vpop.permute.xlu1 %1147 }
0x1862   :  { %v1150_v18 = vmul.f32 %v1674_v21, %v1148_v29 }
0x1864   :  { %1152 = vrot.lane.b32.xlu0 %v1150_v18, %s1692_s30 }
0x18d6   :  { %v1153_v31 = vpop.permute.xlu0 %1152 }
0x18d7   :  { %1574 = vmatmul.mubr.msk.f32.vlgmr.msra.gmra.mxu1 %vm61_vm4, %v1153_v31 }
0x1997   :  { %v1225_v32 = vpop.f32.mrf.mxu1 }
0x1998   :  { %v1230_v33 = vrot.slane %v1225_v32, 6 }
0x1999   :  { %v1575_v34 = vpop.f32.mrf.mxu1 }
0x199a   :  { %v1232_v35 = vadd.f32 %v1230_v33, %v1886_v47  ;;  %v1241_v47 = vrot.slane %v1144_v27, 6 }
0x199c   :  { %1677 = vtanh.f32 %v1232_v35  ;;  %v1413_v37 = vmul.f32 -1.442695, %v1232_v35 }
0x199e   :  { %1679 = vpow2.f32 %v1413_v37 }
0x19a9   :  { %v1678_v36 = vpop.eup %1677 }
0x19aa   :  { %1245 = vrot.lane.b32.xlu1 %v1678_v36, %s1689_s1 }
0x19ab   :  { %v1680_v9 = vpop.eup %1679 }
0x19ac   :  { %v1236_v39 = vadd.f32 1.0, %v1680_v9 }
0x19ae   :  { %1681 = vrcp.f32 %v1236_v39 }
0x19bb   :  { %v1682_v40 = vpop.eup %1681 }
0x19bc   :  { %v1243_v43 = vmul.f32 %v1682_v40, %v1241_v47 }
0x1a1c   :  { %v1246_v41 = vpop.permute.xlu1 %1245 }
0x1a1d   :  { %v1248_v42 = vmul.f32 %v1682_v40, %v1246_v41 }
0x1a1f   :  { %1250 = vrot.lane.b32.xlu0 %v1248_v42, %s1690_s2 }
0x1a23   :  { %371 = vrot.lane.b32.xlu0 %v1814_v52, %s1692_s30 }
0x1a27   :  { %599 = vrot.lane.b32.xlu0 %v1858_v38, %s1692_s30 }
0x1a2b   :  { %1043 = vrot.lane.b32.xlu0 %v1041_v6, %s1692_s30 }
0x1a2f   :  { %819 = vrot.lane.b32.xlu0 %v1909_v30, %s1692_s30 }
0x1a91   :  { %v1251_v0 = vpop.permute.xlu0 %1250 }
0x1a92   :  { %v1253_v44 = vadd.f32 %v1251_v0, %v1243_v43 }
0x1a94   :  { %1683 = vtanh.f32 %v1253_v44 }
0x1a95   :  { %v372_v45 = vpop.permute.xlu0 %371 }
0x1a96   :  { %375 = vst.msk [vmem:[#allocation2] sm:$0xc] %vm374_vm14, %v372_v45 }
0x1a97   :  { %377 = vst.msk [vmem:[#allocation2 + $0xe] sm:$0xc] %vm376_vm15, %v372_v45 }
0x1a98   :  { %1155 = vst.msk [vmem:[#allocation2 + $0x10] sm:$0x3] %vm263_vm6, %v1153_v31  ;;  %vm490_vm6 = vcmask 160852  }
0x1a99   :  { %1156 = vst.msk [vmem:[#allocation2 + $0x2] sm:$0x3] %vm265_vm7, %v1153_v31  ;;  %v600_v52 = vpop.permute.xlu0 %599 }
0x1a9a   :  { %603 = vst.msk [vmem:[#allocation2] sm:$0xc0] %vm602_vm2, %v600_v52 }
0x1a9b   :  { %605 = vst.msk [vmem:[#allocation2 + $0x6] sm:$0xc0] %vm604_vm3, %v600_v52 }
0x1a9d   :  { %v1044_v38 = vpop.permute.xlu0 %1043 }
0x1aa1   :  { %v1684_v30 = vpop.eup %1683  ;;  %v820_v46 = vpop.permute.xlu0 %819 }
0x1aa2   :  { %822 = vst.msk [vmem:[#allocation2 + $0x8] sm:$0xc] %vm374_vm14, %v820_v46  ;;  %1256 = vrot.lane.b32.xlu1 %v1684_v30, %s1691_s29 }
0x1aa3   :  { %823 = vst.msk [vmem:[#allocation2 + $0x6] sm:$0xc] %vm376_vm15, %v820_v46 }
0x1aa6   :  { %485 = vrot.lane.b32.xlu1 %v1832_v15, %s1692_s30 }
0x1aaa   :  { %931 = vrot.lane.b32.xlu1 %v1927_v49, %s1692_s30 }
0x1b14   :  { %v1257_v15 = vpop.permute.xlu1 %1256 }
0x1b15   :  { %v1259_v49 = vmul.f32 %v1682_v40, %v1257_v15 }
0x1b17   :  { %1261 = vrot.lane.b32.xlu1 %v1259_v49, %s1692_s30 }
0x1b18   :  { %v486_v53 = vpop.permute.xlu1 %485 }
0x1b19   :  { %489 = vst.msk [vmem:[#allocation2] sm:$0x30] %vm488_vm5, %v486_v53 }
0x1b1a   :  { %491 = vst.msk [vmem:[#allocation2 + $0xa] sm:$0x30] %vm490_vm6, %v486_v53 }
0x1b1b   :  { %1046 = vst.msk [vmem:[#allocation2 + $0x8] sm:$0xc0] %vm602_vm2, %v1044_v38 }
0x1b1c   :  { %1047 = vst.msk [vmem:[#allocation2 - $0x2] sm:$0xc0] %vm604_vm3, %v1044_v38  ;;  %v932_v54 = vpop.permute.xlu1 %931 }
0x1b1d   :  { %934 = vst.msk [vmem:[#allocation2 + $0x8] sm:$0x30] %vm488_vm5, %v932_v54 }
0x1b1e   :  { %935 = vst.msk [vmem:[#allocation2 + $0x2] sm:$0x30] %vm490_vm6, %v932_v54 }
0x1b24   :  { %v1267_v57 = vld [vmem:[#allocation2 + $0x8] sm:$0xff] }
0x1b89   :  { %v1262_v55 = vpop.permute.xlu1 %1261 }
0x1b8a   :  { %1264 = vst.msk [vmem:[#allocation2 + $0x10] sm:$0xc] %vm374_vm14, %v1262_v55 }
0x1b8b   :  { %1265 = vst.msk [vmem:[#allocation2 - $0x2] sm:$0xc] %vm376_vm15, %v1262_v55 }
0x1b91   :  { %v1268_v3 = vld [vmem:[#allocation2 + $0x10] sm:$0xf] }
0x1b92   :  { %v1266_v56 = vld [vmem:[#allocation2] sm:$0xff] }
0x1b93   :  { %1583 = vmatmul.mubr.msk.f32.vlgmr.msra.gmra.mxu0 %vm61_vm4, %v1266_v56 }
0x1b94   :  { %1585 = vmatprep.mubr.msk.f32.mxu0 %vm1688_vm1, %v1686_v2 }
0x1b97   :  { %1586 = vmatmul.mubr.msk.f32.gmra.mxu0 %vm61_vm4, %v1267_v57 }
0x1b98   :  { %1588 = vmatprep.mubr.msk.f32.mxu0 %vm1688_vm1, %v1686_v2  ;;  %vm1372_vm1 = vcmask 35840  }
0x1b9b   :  { %1589 = vmatmul.mubr.msk.f32.gmra.mxu0 %vm61_vm4, %v1268_v3 }
0x1c53   :  { %v1355_v59 = vpop.f32.mrf.mxu0 }
0x1c54   :  { %v1356_v60 = vadd.f32 %v1414_v58, %v1355_v59 }
0x1c55   :  { %v1584_v5 = vpop.f32.mrf.mxu0 }
0x1c56   :  { %1370 = vst.msk [vmem:[%s2017_s4] sm:$0xff] %vm1369_vm0, %v1356_v60 }
0x1c57   :  { %v1360_v61 = vpop.f32.mrf.mxu0 }
0x1c58   :  { %v1361_v8 = vadd.f32 %v1414_v58, %v1360_v61 }
0x1c59   :  { %v1587_v62 = vpop.f32.mrf.mxu0 }
0x1c5a   :  { %1371 = vst.msk [vmem:[%s2017_s4 + $0x8] sm:$0xff] %vm1369_vm0, %v1361_v8 }
0x1c5b   :  { %v1365_v2 = vpop.f32.mrf.mxu0 }
0x1c5c   :  { %v1366_v63 = vadd.f32 %v1414_v58, %v1365_v2 }
0x1c5d   :  { %v1590_v1 = vpop.f32.mrf.mxu0 }
0x1c5e   :  { %1373 = vst.msk [vmem:[%s2017_s4 + $0x10] sm:$0xf] %vm1372_vm1, %v1366_v63 }

</bundles_post_ra>
